<compile_context>
chip_gen: v6e
topology: v6e:2x2x1
jax: 0.10.0
libtpu: 0.0.40
codegen_flags: <defaults>
</compile_context>

<pallas_src>
import functools

import jax
import jax.numpy as jnp
from jax import lax
from jax.experimental import pallas as pl
from jax.experimental.pallas import tpu as pltpu

_NUM_CLASSES = 5
_LANE = 128
_MAX_TILE = 128 * 1024      # lanes per grid step: 5*128K*4B = 2.5 MiB per logits block
_MIN_PALLAS_BATCH = 2048    # below this, plain XLA is faster than a kernel launch


def _round_up(x: int, m: int) -> int:
    return ((x + m - 1) // m) * m


def _num_tensorcores() -> int:
    """Best-effort TensorCore-per-chip count (2 on v7x, 1 on v5e/v6e)."""
    try:
        info = pltpu.get_tpu_info()
    except Exception:
        return 1
    for name in ("tensorcores_per_chip", "num_tensorcores", "num_cores", "core_count"):
        n = getattr(info, name, None)
        if n is None:
            continue
        try:
            n = int(n)
        except Exception:
            continue
        if 1 <= n <= 8:
            return n
    return 1


def _ce_reorder_kernel(logits_ref, target_ref, out_ref, acc_ref, *,
                       label_smoothing: float, batch: int, tile: int,
                       steps_per_core: int, needs_mask: bool):
    p = pl.program_id(0)   # core-parallel partial-sum axis (size 1 on 1-TC chips)
    j = pl.program_id(1)   # batch-tile reduction axis ("arbitrary")

    @pl.when(j == 0)
    def _init():
        acc_ref[...] = jnp.zeros_like(acc_ref)

    x = logits_ref[...].astype(jnp.float32)     # [5, tile]  classes on sublanes
    t = target_ref[...].astype(jnp.int32)       # [1, tile]  (int8 in HBM)

    # Stable log-sum-exp with axis-0 (sublane / XLU) reductions over the full
    # [5, tile] block — one pass of VPU/EUP work instead of 5 sliced passes.
    m = jnp.max(x, axis=0, keepdims=True)                       # [1, tile]
    sum_exp = jnp.sum(jnp.exp(x - m), axis=0, keepdims=True)    # [1, tile]
    lse = m + jnp.log(sum_exp)

    # Gather x[target] with a single compare+select over the block, then a
    # sublane reduction (no one-hot / logp temporaries, no MXU).
    cls = lax.broadcasted_iota(jnp.int32, x.shape, 0)           # [5, tile]
    x_t = jnp.sum(jnp.where(cls == t, x, 0.0), axis=0, keepdims=True)

    eps = float(label_smoothing)
    if eps == 0.0:
        # loss_i = lse - x[tgt]
        per = lse - x_t
    else:
        # loss_i = lse - (1-eps)*x[tgt] - (eps/C)*sum_c x_c
        sum_x = jnp.sum(x, axis=0, keepdims=True)
        per = lse - (1.0 - eps) * x_t - (eps / _NUM_CLASSES) * sum_x

    if needs_mask:
        # Only the global last block can be partial; out-of-bounds lanes hold
        # garbage (possibly NaN/Inf in `per`) — the select below zeroes them
        # BEFORE accumulation, so the accumulator stays clean.
        block_start = (p * steps_per_core + j) * tile
        is_partial = block_start + tile > batch

        @pl.when(is_partial)
        def _acc_masked():
            lane = lax.broadcasted_iota(jnp.int32, (1, tile), 1)
            acc_ref[...] += jnp.where(block_start + lane < batch, per, 0.0)

        @pl.when(jnp.logical_not(is_partial))
        def _acc_full():
            acc_ref[...] += per
    else:
        acc_ref[...] += per

    @pl.when(j == pl.num_programs(1) - 1)
    def _finalize():
        total = jnp.sum(acc_ref[...], keepdims=True)            # (1, 1)
        out_ref[...] = jnp.broadcast_to(total[None], out_ref.shape)


def _xla_cross_entropy(logits, tgt_flat, label_smoothing):
    """Plain-XLA path for small batches (kernel overhead would dominate)."""
    x = logits.astype(jnp.float32)
    lse = jax.nn.logsumexp(x, axis=-1)
    x_t = jnp.take_along_axis(x, tgt_flat.astype(jnp.int32)[:, None], axis=-1)[:, 0]
    eps = float(label_smoothing)
    if eps == 0.0:
        per = lse - x_t
    else:
        per = lse - (1.0 - eps) * x_t - (eps / _NUM_CLASSES) * jnp.sum(x, axis=-1)
    return jnp.mean(per)


def cross_entropy_loss_image_reorder(predicted: jax.Array,
                                     target: jax.Array,
                                     label_smoothing: float = 0.0,
                                     *,
                                     max_tile: int = _MAX_TILE,
                                     use_pallas=None) -> jax.Array:
    """predicted: [..., 5] float, target: [...] int -> scalar loss (f32)."""
    logits = predicted.reshape(-1, _NUM_CLASSES)
    tgt_flat = target.reshape(-1)
    b = logits.shape[0]

    if use_pallas is None:
        use_pallas = b >= _MIN_PALLAS_BATCH
    if not use_pallas:
        return _xla_cross_entropy(logits, tgt_flat, label_smoothing)

    # Lane-dense layout: batch -> 128-lane axis, 5 classes -> sublanes.
    # (With allow_input_fusion these relayouts can be fused into the pallas
    # operand instead of materializing an extra HBM pass.)
    logits_t = jnp.transpose(logits, (1, 0))            # [5, B]
    tgt = tgt_flat.reshape(1, -1).astype(jnp.int8)      # [1, B], 1 B/element

    if b < _LANE:
        # Tiny batch forced onto the kernel: pad (cheaply) to one lane group so
        # the single block never exceeds the array extent.
        pad = _LANE - b
        logits_t = jnp.pad(logits_t, ((0, 0), (0, pad)))
        tgt = jnp.pad(tgt, ((0, 0), (0, pad)))
        tile = _LANE
    else:
        # tile <= b and a multiple of 128: only the trailing block is partial,
        # handled by Pallas partial-block reads + the in-kernel mask (no pad).
        tile = max(_LANE, (min(int(max_tile), b) // _LANE) * _LANE)

    n_blocks = pl.cdiv(b, tile)

    # Only split the reduction across cores when the chip actually has >1 TC
    # (v7x); on v5e/v6e this stays a size-1 axis with zero extra iterations.
    n_cores = _num_tensorcores()
    if n_cores > 1 and (n_blocks < 2 or n_blocks % n_cores != 0):
        n_cores = 1
    steps_per_core = n_blocks // n_cores

    kernel = functools.partial(
        _ce_reorder_kernel,
        label_smoothing=float(label_smoothing),
        batch=b,
        tile=tile,
        steps_per_core=steps_per_core,
        needs_mask=(b % tile != 0),
    )

    out = pl.pallas_call(
        kernel,
        out_shape=jax.ShapeDtypeStruct((n_cores, 8, _LANE), jnp.float32),
        grid=(n_cores, steps_per_core),
        in_specs=[
            pl.BlockSpec((_NUM_CLASSES, tile),
                         lambda p, j: (0, p * steps_per_core + j)),
            pl.BlockSpec((1, tile),
                         lambda p, j: (0, p * steps_per_core + j)),
        ],
        out_specs=pl.BlockSpec((1, 8, _LANE), lambda p, j: (p, 0, 0)),
        scratch_shapes=[pltpu.VMEM((1, tile), jnp.float32)],
        compiler_params=pltpu.CompilerParams(
            dimension_semantics=("parallel", "arbitrary"),
            allow_input_fusion=[True, True]),
    )(logits_t, tgt)

    # Each core's slab is filled with its partial sum; combine, normalize by B.
    return jnp.sum(out[:, 0, 0]) / jnp.float32(b)


def _reference(predicted, target, label_smoothing=0.0):
    logits = predicted.reshape(-1, _NUM_CLASSES).astype(jnp.float32)
    tgt = target.reshape(-1).astype(jnp.int32)
    logp = jax.nn.log_softmax(logits, axis=-1)
    onehot = jax.nn.one_hot(tgt, _NUM_CLASSES, dtype=jnp.float32)
    q = (1.0 - label_smoothing) * onehot + label_smoothing / _NUM_CLASSES
    return jnp.mean(-jnp.sum(q * logp, axis=-1))


if __name__ == "__main__":
    key = jax.random.PRNGKey(0)
    k1, k2, k3, k4 = jax.random.split(key, 4)

    fwd = jax.jit(cross_entropy_loss_image_reorder,
                  static_argnames=("label_smoothing", "max_tile", "use_pallas"))

    # Small shape from the module spec: predicted [batch, 5], target [batch].
    batch = 8
    predicted = jax.random.normal(k1, (batch, 5), dtype=jnp.float32)
    target = jax.random.randint(k2, (batch,), 0, 5, dtype=jnp.int32)

    # 1) Pallas kernel forced at tiny batch (single masked block), with and
    #    without label smoothing (module default is 0.0).
    loss = jax.block_until_ready(
        fwd(predicted, target, label_smoothing=0.1, use_pallas=True))
    ref = _reference(predicted, target, 0.1)
    assert jnp.allclose(loss, ref, atol=1e-5, rtol=1e-5), (loss, ref)

    loss0 = jax.block_until_ready(
        fwd(predicted, target, label_smoothing=0.0, use_pallas=True))
    ref0 = _reference(predicted, target, 0.0)
    assert jnp.allclose(loss0, ref0, atol=1e-5, rtol=1e-5), (loss0, ref0)

    # 2) Auto path: tiny batch falls back to plain XLA (same semantics).
    loss_auto = jax.block_until_ready(fwd(predicted, target, label_smoothing=0.1))
    assert jnp.allclose(loss_auto, ref, atol=1e-5, rtol=1e-5), (loss_auto, ref)

    # 3) Multi-step reduction grid + partial trailing block (600 = 4*128 + 88),
    #    forcing a small tile so the grid has several steps per core.
    batch2 = 600
    predicted2 = jax.random.normal(k3, (batch2, 5), dtype=jnp.float32)
    target2 = jax.random.randint(k4, (batch2,), 0, 5, dtype=jnp.int32)
    loss2 = jax.block_until_ready(
        fwd(predicted2, target2, label_smoothing=0.05, max_tile=128, use_pallas=True))
    ref2 = _reference(predicted2, target2, 0.05)
    assert jnp.allclose(loss2, ref2, atol=1e-5, rtol=1e-5), (loss2, ref2)

    print("KERNEL_OK")
</pallas_src>

<mosaic_0001>
module attributes {stable_mosaic.version = 11 : i64} {
  func.func @_ce_reorder_kernel(%arg0: i32, %arg1: i32, %arg2: memref<5x128xf32, #tpu.memory_space<vmem>>, %arg3: memref<1x128xi8, #tpu.memory_space<vmem>>, %arg4: memref<1x8x128xf32, #tpu.memory_space<vmem>>, %arg5: memref<1x128xf32, #tpu.memory_space<vmem>>) attributes {dimension_semantics = [#tpu.dimension_semantics<parallel>, #tpu.dimension_semantics<arbitrary>], iteration_bounds = array<i64: 1, 1>, scalar_prefetch = 0 : i64, scratch_operands = 1 : i64, tpu.core_type = #tpu.core_type<tc>, window_params = [{transform_indices = @transform_0, window_bounds = array<i64: 5, 128>}, {transform_indices = @transform_1, window_bounds = array<i64: 1, 128>}, {transform_indices = @transform_2, window_bounds = array<i64: 1, 8, 128>}]} {
    %c0_i32 = arith.constant 0 : i32
    %0 = arith.cmpi eq, %arg1, %c0_i32 : i32
    %1 = arith.extui %0 : i1 to i32
    %c0_i32_0 = arith.constant 0 : i32
    %2 = arith.cmpi ne, %1, %c0_i32_0 : i32
    scf.if %2 {
      %cst_15 = arith.constant 0.000000e+00 : f32
      %43 = vector.broadcast %cst_15 : f32 to vector<1x128xf32>
      %c0_16 = arith.constant 0 : index
      %c0_17 = arith.constant 0 : index
      %44 = vector.load %arg5[%c0_16, %c0_17] : memref<1x128xf32, #tpu.memory_space<vmem>>, vector<1x128xf32>
      tpu.vector_store %arg5[%c0_16, %c0_17], %43 {strides = array<i32>} : memref<1x128xf32, #tpu.memory_space<vmem>>, vector<1x128xf32>,
    } else {
    }
    %c0 = arith.constant 0 : index
    %c0_1 = arith.constant 0 : index
    %3 = vector.load %arg2[%c0, %c0_1] : memref<5x128xf32, #tpu.memory_space<vmem>>, vector<5x128xf32>
    %c0_2 = arith.constant 0 : index
    %c0_3 = arith.constant 0 : index
    %4 = vector.load %arg3[%c0_2, %c0_3] : memref<1x128xi8, #tpu.memory_space<vmem>>, vector<1x128xi8>
    %5 = arith.extsi %4 : vector<1x128xi8> to vector<1x128xi32>
    %cst = arith.constant dense<0xFF800000> : vector<128xf32>
    %6 = vector.multi_reduction <maximumf>, %3, %cst [0] : vector<5x128xf32> to vector<128xf32>
    %7 = vector.shape_cast %6 : vector<128xf32> to vector<1x128xf32>
    %8 = vector.broadcast %7 : vector<1x128xf32> to vector<5x128xf32>
    %9 = arith.subf %3, %8 : vector<5x128xf32>
    %10 = math.exp %9 : vector<5x128xf32>
    %cst_4 = arith.constant dense<0.000000e+00> : vector<128xf32>
    %11 = vector.multi_reduction <add>, %10, %cst_4 [0] : vector<5x128xf32> to vector<128xf32>
    %12 = vector.shape_cast %11 : vector<128xf32> to vector<1x128xf32>
    %13 = math.log %12 : vector<1x128xf32>
    %14 = arith.addf %7, %13 : vector<1x128xf32>
    %15 = tpu.iota {dimensions = array<i32: 0>} : vector<5x128xi32>
    %16 = vector.broadcast %5 : vector<1x128xi32> to vector<5x128xi32>
    %17 = arith.cmpi eq, %15, %16 : vector<5x128xi32>
    %cst_5 = arith.constant 0.000000e+00 : f32
    %18 = vector.broadcast %cst_5 : f32 to vector<5x128xf32>
    %19 = arith.select %17, %3, %18 : vector<5x128xi1>, vector<5x128xf32>
    %cst_6 = arith.constant dense<0.000000e+00> : vector<128xf32>
    %20 = vector.multi_reduction <add>, %19, %cst_6 [0] : vector<5x128xf32> to vector<128xf32>
    %21 = vector.shape_cast %20 : vector<128xf32> to vector<1x128xf32>
    %cst_7 = arith.constant dense<0.000000e+00> : vector<128xf32>
    %22 = vector.multi_reduction <add>, %3, %cst_7 [0] : vector<5x128xf32> to vector<128xf32>
    %23 = vector.shape_cast %22 : vector<128xf32> to vector<1x128xf32>
    %cst_8 = arith.constant 0.899999976 : f32
    %24 = vector.broadcast %cst_8 : f32 to vector<1x128xf32>
    %25 = arith.mulf %24, %21 : vector<1x128xf32>
    %26 = arith.subf %14, %25 : vector<1x128xf32>
    %cst_9 = arith.constant 2.000000e-02 : f32
    %27 = vector.broadcast %cst_9 : f32 to vector<1x128xf32>
    %28 = arith.mulf %27, %23 : vector<1x128xf32>
    %29 = arith.subf %26, %28 : vector<1x128xf32>
    %c1_i32 = arith.constant 1 : i32
    %30 = arith.muli %arg0, %c1_i32 : i32
    %31 = arith.addi %30, %arg1 : i32
    %c128_i32 = arith.constant 128 : i32
    %32 = arith.muli %31, %c128_i32 : i32
    %c128_i32_10 = arith.constant 128 : i32
    %33 = arith.addi %32, %c128_i32_10 : i32
    %c8_i32 = arith.constant 8 : i32
    %34 = arith.cmpi sgt, %33, %c8_i32 : i32
    %35 = arith.extui %34 : i1 to i32
    %c0_i32_11 = arith.constant 0 : i32
    %36 = arith.cmpi ne, %35, %c0_i32_11 : i32
    scf.if %36 {
      %43 = tpu.iota {dimensions = array<i32: 1>} : vector<1x128xi32>
      %c0_15 = arith.constant 0 : index
      %c0_16 = arith.constant 0 : index
      %44 = vector.load %arg5[%c0_15, %c0_16] : memref<1x128xf32, #tpu.memory_space<vmem>>, vector<1x128xf32>
      %45 = vector.broadcast %32 : i32 to vector<1x128xi32>
      %46 = arith.addi %45, %43 : vector<1x128xi32>
      %c8_i32_17 = arith.constant 8 : i32
      %47 = vector.broadcast %c8_i32_17 : i32 to vector<1x128xi32>
      %48 = arith.cmpi slt, %46, %47 : vector<1x128xi32>
      %cst_18 = arith.constant 0.000000e+00 : f32
      %49 = vector.broadcast %cst_18 : f32 to vector<1x128xf32>
      %50 = arith.select %48, %29, %49 : vector<1x128xi1>, vector<1x128xf32>
      %51 = arith.addf %44, %50 : vector<1x128xf32>
      %c0_19 = arith.constant 0 : index
      %c0_20 = arith.constant 0 : index
      %52 = vector.load %arg5[%c0_19, %c0_20] : memref<1x128xf32, #tpu.memory_space<vmem>>, vector<1x128xf32>
      tpu.vector_store %arg5[%c0_19, %c0_20], %51 {strides = array<i32>} : memref<1x128xf32, #tpu.memory_space<vmem>>, vector<1x128xf32>,
    } else {
    }
    %true = arith.constant true
    %37 = arith.xori %34, %true : i1
    %38 = arith.extui %37 : i1 to i32
    %c0_i32_12 = arith.constant 0 : i32
    %39 = arith.cmpi ne, %38, %c0_i32_12 : i32
    scf.if %39 {
      %c0_15 = arith.constant 0 : index
      %c0_16 = arith.constant 0 : index
      %43 = vector.load %arg5[%c0_15, %c0_16] : memref<1x128xf32, #tpu.memory_space<vmem>>, vector<1x128xf32>
      %44 = arith.addf %43, %29 : vector<1x128xf32>
      %c0_17 = arith.constant 0 : index
      %c0_18 = arith.constant 0 : index
      %45 = vector.load %arg5[%c0_17, %c0_18] : memref<1x128xf32, #tpu.memory_space<vmem>>, vector<1x128xf32>
      tpu.vector_store %arg5[%c0_17, %c0_18], %44 {strides = array<i32>} : memref<1x128xf32, #tpu.memory_space<vmem>>, vector<1x128xf32>,
    } else {
    }
    %c0_i32_13 = arith.constant 0 : i32
    %40 = arith.cmpi eq, %arg1, %c0_i32_13 : i32
    %41 = arith.extui %40 : i1 to i32
    %c0_i32_14 = arith.constant 0 : i32
    %42 = arith.cmpi ne, %41, %c0_i32_14 : i32
    scf.if %42 {
      %c0_15 = arith.constant 0 : index
      %c0_16 = arith.constant 0 : index
      %43 = vector.load %arg5[%c0_15, %c0_16] : memref<1x128xf32, #tpu.memory_space<vmem>>, vector<1x128xf32>
      %44 = vector.shape_cast %43 : vector<1x128xf32> to vector<1x1x128xf32>
      %cst_17 = arith.constant dense<0.000000e+00> : vector<1xf32>
      %45 = vector.multi_reduction <add>, %44, %cst_17 [1, 2] : vector<1x1x128xf32> to vector<1xf32>
      %46 = vector.shape_cast %45 : vector<1xf32> to vector<1x1x1xf32>
      %47 = vector.extract %46[0, 0, 0] : f32 from vector<1x1x1xf32>
      %48 = vector.broadcast %47 : f32 to vector<1x1xf32>
      %49 = vector.shape_cast %48 : vector<1x1xf32> to vector<1x1x1xf32>
      %50 = vector.shape_cast %49 : vector<1x1x1xf32> to vector<1x1x1xf32>
      %51 = vector.broadcast %50 : vector<1x1x1xf32> to vector<1x8x128xf32>
      %c0_18 = arith.constant 0 : index
      %c0_19 = arith.constant 0 : index
      %c0_20 = arith.constant 0 : index
      %52 = vector.load %arg4[%c0_18, %c0_19, %c0_20] : memref<1x8x128xf32, #tpu.memory_space<vmem>>, vector<1x8x128xf32>
      tpu.vector_store %arg4[%c0_18, %c0_19, %c0_20], %51 {strides = array<i32>} : memref<1x8x128xf32, #tpu.memory_space<vmem>>, vector<1x8x128xf32>,
    } else {
    }
    return
  }
  func.func @transform_0(%arg0: i32, %arg1: i32) -> (i32, i32) {
    %c1_i32 = arith.constant 1 : i32
    %0 = arith.muli %arg0, %c1_i32 : i32
    %1 = arith.addi %0, %arg1 : i32
    %c0_i32 = arith.constant 0 : i32
    %c0_i32_0 = arith.constant 0 : i32
    return %c0_i32, %1 : i32, i32
  }
  func.func @transform_1(%arg0: i32, %arg1: i32) -> (i32, i32) {
    %c1_i32 = arith.constant 1 : i32
    %0 = arith.muli %arg0, %c1_i32 : i32
    %1 = arith.addi %0, %arg1 : i32
    %c0_i32 = arith.constant 0 : i32
    %c0_i32_0 = arith.constant 0 : i32
    return %c0_i32, %1 : i32, i32
  }
  func.func @transform_2(%arg0: i32, %arg1: i32) -> (i32, i32, i32) {
    %c0_i32 = arith.constant 0 : i32
    %c0_i32_0 = arith.constant 0 : i32
    %c0_i32_1 = arith.constant 0 : i32
    return %arg0, %c0_i32, %c0_i32_0 : i32, i32, i32
  }
}

</mosaic_0001>

<bundles_post_ra>
// kernel: cross_entropy_loss_image_reorder.2
= control target key start
LH: loop header
LB: loop body
LE: loop exit
PB: predicated region body
PF: predicated region fallthrough
CT: control target
= control target key end

     0   :  { %s294_s0 = inlined_call_operand.vmem [shape: f32[5,8], index: 0, kind: input, shape index: {}]   ;;  %s295_s1 = inlined_call_operand.<no memory space> [shape: f32[], index: 1, kind: input, shape index: {}]   ;;  %s296_s2 = inlined_call_operand.vmem [shape: s8[1,8], index: 2, kind: input, shape index: {}]   ;;  %s297_s3 = inlined_call_operand.<no memory space> [shape: s8[], index: 3, kind: input, shape index: {}]   ;;  %s298_s4 = inlined_call_operand.vmem [shape: f32[1,8,128], index: 4, kind: output, shape index: {}]  }
   0x1   :  { %v9_v0 = vstv %s295_s1  ;;  %v10_v1 = vstv %s297_s3 }
   0x2   :  { %v12_v2 = vshll.u32 %v10_v1, 24 }
   0x4   :  { %v13_v3 = vshra.s32 %v12_v2, 24 }
   0x5   :  { %v78_v4 = vlaneseq  ;;  %v97_v5 = vld [vmem:[%s296_s2] ss:$0 sm:$0xf]  ;;  %v239_v10 = vmov 0.0   ;;  %v240_v15 = vmov 0   ;;  %vm131_vm3 = vcmask 1044480  }
   0x6   :  { %v98_v6 = vunpack.c.0.s8 %v97_v5  ;;  %v73_v7 = vld [vmem:[%s294_s0] sm:$0x1f]  ;;  %127 = vst [vmem:[#allocation2] sm:$0x1] %v239_v10  ;;  %vm205_vm5 = vcmask 1040384  }
   0x7   :  { %v79_v8 = vshrl.u32 %v78_v4, 7  ;;  %v278_v9 = vand.u32 127, %v78_v4 }
   0x9   :  { %vm81_vm0 = vcmp.lt.s32.totalorder %v79_v8, 5  ;;  %vm88_vm1 = vcmp.lt.s32.totalorder %v278_v9, 8  ;;  %vm109_vm2 = vcmp.lt.s32.totalorder %v79_v8, 1  ;;  %v156_v30 = vsub.s32 0, %v79_v8 }
   0xa   :  { %v82_v11 = vsel %vm81_vm0, %v73_v7, %v9_v0  ;;  %v110_v12 = vsel %vm109_vm2, %v98_v6, %v13_v3 }
   0xb   :  { %v89_v13 = vsel %vm88_vm1, %v82_v11, %v9_v0  ;;  %v117_v14 = vsel %vm88_vm1, %v110_v12, %v13_v3 }
   0xc   :  { %92 = vst [vmem:[#allocation13] sm:$0xff] %v89_v13  ;;  %v120_v16 = vpack.c.b16 %v240_v15, %v117_v14 }
   0xd   :  { %v187_v62 = vld [vmem:[#allocation2] sm:$0x1] }
   0xe   :  { %v121_v17 = vpack.c.b8 %v240_v15, %v120_v16 }
  0x10   :  { %122 = vst [vmem:[#allocation14] sm:$0x1] %v121_v17 }
  0x13   :  { %v128_v18 = vld [vmem:[#allocation13] sm:$0x1f] }
  0x14   :  { %v132_v19 = vsel %vm131_vm3, %v128_v18, -inf  ;;  %v167_v37 = vsel %vm131_vm3, %v128_v18, 0.0 }
  0x15   :  { %v133_v20 = vrot.slane %v132_v19, 4  ;;  %v168_v41 = vrot.slane %v167_v37, 4 }
  0x17   :  { %v134_v21 = vmax.f32 %v132_v19, %v133_v20  ;;  %v129_v27 = vld [vmem:[#allocation14] sm:$0x1]  ;;  %v169_v45 = vadd.f32 %v168_v41, %v167_v37 }
  0x18   :  { %v130_v29 = vunpack.c.0.s8 %v129_v27 }
  0x19   :  { %v135_v22 = vrot.slane %v134_v21, 2  ;;  %v170_v48 = vrot.slane %v169_v45, 2 }
  0x1a   :  { %v157_v31 = vrot.slane %v130_v29, %v156_v30 }
  0x1b   :  { %v136_v23 = vmax.f32 %v134_v21, %v135_v22  ;;  %v171_v50 = vadd.f32 %v170_v48, %v169_v45 }
  0x1c   :  { %vm158_vm4 = vcmp.eq.s32.totalorder %v79_v8, %v157_v31 }
  0x1d   :  { %v137_v24 = vrot.slane %v136_v23, 1  ;;  %v159_v32 = vsel %vm158_vm4, %v128_v18, 0.0  ;;  %v172_v52 = vrot.slane %v171_v50, 1 }
  0x1e   :  { %v160_v35 = vsel %vm131_vm3, %v159_v32, 0.0 }
  0x1f   :  { %v138_v25 = vmax.f32 %v136_v23, %v137_v24  ;;  %v161_v39 = vrot.slane %v160_v35, 4  ;;  %v173_v54 = vadd.f32 %v172_v52, %v171_v50 }
  0x21   :  { %v139_v26 = vsub.f32 %v128_v18, %v138_v25  ;;  %v162_v43 = vadd.f32 %v161_v39, %v160_v35  ;;  %v176_v59 = vmul.f32 0.02, %v173_v54 }
  0x23   :  { %v140_v28 = vmul.f32 1.442695, %v139_v26  ;;  %v163_v47 = vrot.slane %v162_v43, 2 }
  0x25   :  { %235 = vpow2.f32 %v140_v28  ;;  %v164_v49 = vadd.f32 %v163_v47, %v162_v43 }
  0x27   :  { %v165_v51 = vrot.slane %v164_v49, 1 }
  0x29   :  { %v166_v53 = vadd.f32 %v165_v51, %v164_v49 }
  0x2b   :  { %v174_v57 = vmul.f32 0.9, %v166_v53 }
  0x32   :  { %v236_v33 = vpop.eup %235 }
  0x33   :  { %v142_v34 = vsel %vm131_vm3, %v236_v33, 0.0 }
  0x34   :  { %v143_v36 = vrot.slane %v142_v34, 4 }
  0x36   :  { %v144_v38 = vadd.f32 %v143_v36, %v142_v34 }
  0x38   :  { %v145_v40 = vrot.slane %v144_v38, 2 }
  0x3a   :  { %v146_v42 = vadd.f32 %v145_v40, %v144_v38 }
  0x3c   :  { %v147_v44 = vrot.slane %v146_v42, 1 }
  0x3e   :  { %v148_v46 = vadd.f32 %v147_v44, %v146_v42 }
  0x40   :  { %237 = vlog2.f32 %v148_v46 }
  0x4d   :  { %v238_v55 = vpop.eup %237 }
  0x4e   :  { %v150_v56 = vmul.f32 0.6931472, %v238_v55 }
  0x50   :  { %v151_v58 = vadd.f32 %v150_v56, %v138_v25 }
  0x52   :  { %v175_v60 = vsub.f32 %v151_v58, %v174_v57 }
  0x54   :  { %v177_v61 = vsub.f32 %v175_v60, %v176_v59 }
  0x56   :  { %v191_v63 = vsel %vm88_vm1, %v177_v61, 0.0 }
  0x57   :  { %v192_v0 = vadd.f32 %v191_v63, %v187_v62 }
  0x59   :  { %193 = vst [vmem:[#allocation2] sm:$0x1] %v192_v0 }
  0x60   :  { %v204_v1 = vld [vmem:[#allocation2] sm:$0x1] }
  0x61   :  { %v206_v2 = vsel %vm205_vm5, %v204_v1, 0.0 }
  0x62   :  { %207 = vadd.xlane.f32.xlu0 %v206_v2 }
  0xeb   :  { %v208_v3 = vpop.xlane.xlu0 %207 }
  0xec   :  { %v209_v4 = vrot.slane %v208_v3, 4 }
  0xee   :  { %v210_v5 = vadd.f32 %v209_v4, %v208_v3 }
  0xf0   :  { %v211_v6 = vrot.slane %v210_v5, 2 }
  0xf2   :  { %v212_v7 = vadd.f32 %v211_v6, %v210_v5 }
  0xf4   :  { %v213_v8 = vrot.slane %v212_v7, 1 }
  0xf6   :  { %v214_v10 = vadd.f32 %v213_v8, %v212_v7 }
  0xf8   :  { %231 = vpush %v214_v10 }
 0x129   :  { %s232_s0 = spop %231 }
 0x12a   :  { %v216_v11 = vstv %s232_s0 }
 0x12b   :  { %217 = vst [vmem:[%s298_s4] sm:$0xff] %v216_v11 }

</bundles_post_ra>
